<compile_context>
chip_gen: v7x
topology: tpu7x:2x2x1
jax: 0.10.0
libtpu: 0.0.40
codegen_flags: <defaults>
</compile_context>

<pallas_src>
import math

import jax
import jax.numpy as jnp
from jax.experimental import pallas as pl
from jax.experimental.pallas import tpu as pltpu


def _rachet_dma_kernel(x_hbm, o_hbm, sem):
    # Single HBM -> HBM DMA: the only data movement this module performs.
    cp = pltpu.make_async_copy(x_hbm, o_hbm, sem)
    cp.start()
    cp.wait()


def rachet(x, out_shape):
    """Pallas implementation of Rachet.forward.

    Args:
      x: jnp array of shape (B, ...) whose trailing dims flatten to
         8 * out_shape[1] * out_shape[2].
      out_shape: tuple whose [1] and [2] entries give H and W.

    Returns:
      Array of shape (B, 8, out_shape[1], out_shape[2]), same dtype as x.
    """
    b = x.shape[0]
    h, w = int(out_shape[1]), int(out_shape[2])
    n = 8 * h * w

    feat = math.prod(x.shape[1:]) if x.ndim > 1 else 1
    if feat != n:
        raise ValueError(
            f"Rachet: input features per batch ({feat}) != 8*H*W ({n}) "
            f"for out_shape={tuple(out_shape)}")

    # Metadata-only reshape (equivalent to torch .view()) so the DMA source
    # and destination refs have identical shapes.
    x4 = jnp.reshape(x, (b, 8, h, w))

    y = pl.pallas_call(
        _rachet_dma_kernel,
        out_shape=jax.ShapeDtypeStruct((b, 8, h, w), x.dtype),
        in_specs=[pl.BlockSpec(memory_space=pl.ANY)],
        out_specs=pl.BlockSpec(memory_space=pl.ANY),
        scratch_shapes=[pltpu.SemaphoreType.DMA(())],
    )(x4)
    return y


if __name__ == "__main__":
    # Small deterministic example: batch=2, C=8 (fixed by the module),
    # spatial 16x16  ->  flat feature size 8*16*16 = 2048.
    out_shape = (8, 16, 16)
    batch = 2
    feat = 8 * out_shape[1] * out_shape[2]

    key = jax.random.PRNGKey(0)
    x = jax.random.normal(key, (batch, feat), dtype=jnp.float32)

    y = rachet(x, out_shape)
    jax.block_until_ready(y)

    # Correctness check against the pure-reshape reference.
    ref = jnp.reshape(x, (batch, 8, out_shape[1], out_shape[2]))
    assert y.shape == (batch, 8, out_shape[1], out_shape[2])
    assert y.dtype == x.dtype
    assert bool(jnp.all(y == ref))

    print("KERNEL_OK")
</pallas_src>

<mosaic_0001>
module attributes {stable_mosaic.version = 11 : i64} {
  func.func @_rachet_dma_kernel(%arg0: memref<2x8x16x16xf32, #tpu.memory_space<any>>, %arg1: memref<2x8x16x16xf32, #tpu.memory_space<any>>, %arg2: memref<!tpu.dma_semaphore, #tpu.memory_space<semaphore_mem>>) attributes {dimension_semantics = [], scalar_prefetch = 0 : i64, scratch_operands = 1 : i64, tpu.core_type = #tpu.core_type<tc>} {
    tpu.enqueue_dma source(%arg0 : memref<2x8x16x16xf32, #tpu.memory_space<any>>) target(%arg1 : memref<2x8x16x16xf32, #tpu.memory_space<any>>) target_semaphore(%arg2 : memref<!tpu.dma_semaphore, #tpu.memory_space<semaphore_mem>>)
    tpu.wait_dma2 semaphore(%arg2 : memref<!tpu.dma_semaphore, #tpu.memory_space<semaphore_mem>>) src(%arg0 : memref<2x8x16x16xf32, #tpu.memory_space<any>>) dst(%arg1 : memref<2x8x16x16xf32, #tpu.memory_space<any>>)
    return
  }
}

</mosaic_0001>

<bundles_post_ra>
// kernel: tpu_custom_call.1
= control target key start
LH: loop header
LB: loop body
LE: loop exit
PB: predicated region body
PF: predicated region fallthrough
CT: control target
= control target key end

     0   :  { %s36_s6 = smov [#allocation2]   ;;  %s37_s7 = smov [#allocation3]   ;;  %s55_s0 = inlined_call_operand.hbm [shape: f32[2,8,16,16], index: 0, kind: input, shape index: {}]   ;;  %s56_s1 = inlined_call_operand.hbm [shape: f32[2,8,16,16], index: 1, kind: output, shape index: {}]  }
   0x1   :  { %s38_s8 = smov 0  }
   0x2   :  { %18 = dma.general %s55_s0, 4096, %s56_s1, %s36_s6, %s37_s7, [#allocation4], %s38_s8, 0  }
   0x3   :  { %34 = dma.done.wait [#allocation2], 4096 }
   0x4   :  { %35 = vsyncadd [#allocation2], 4294963200 }
   0x5   :  { %24 = vsyncmov [#allocation2] }
   0x8   :  { %s25_s13 = vpop.sfrf %24 }
   0x9   :  { %p30_p0 = scmp.ne.s32.totalorder %s25_s13, 0 }
   0xb   :  { %29 = shalt.err (%p30_p0)  }

</bundles_post_ra>
